<compile_context>
chip_gen: v7x
topology: tpu7x:2x2x1
jax: 0.10.0
libtpu: 0.0.40
codegen_flags: <defaults>
</compile_context>

<pallas_src>
import jax
import jax.numpy as jnp
from jax.experimental import pallas as pl
from jax.experimental.pallas import tpu as pltpu

# Module feature sizes (fc1: 3->64, fc2: 64->32, fc3: 32->3).
D_IN, D_H1, D_H2, D_OUT = 3, 64, 32, 3
# Zero-pad the K=3 contraction of fc1 up to a sublane multiple (done once,
# outside the kernel) so the MXU operands are (8,128)-tile aligned.
K_PAD = 8


def _round_up(n, m):
    return ((n + m - 1) // m) * m


def mlp_kernel(x_ref, w1_ref, b1_ref, w2_ref, b2_ref, w3_ref, b3_ref, o_ref):
    """One batch tile of the 3-layer MLP, computed feature-major (lane-dense).

    x_ref : [K_PAD, TB]  input tile   (batch on the 128-lane axis)
    wN    : [out, in]    resident weights (PyTorch layout)
    bN    : [out, 1]     f32 biases   (broadcast over lanes)
    o_ref : [D_OUT, TB]  output tile  (f32)
    """
    cdt = w1_ref.dtype  # matmul operand dtype (f32 or bf16); accumulation is f32

    x = x_ref[...]
    h1 = jnp.dot(w1_ref[...], x, preferred_element_type=jnp.float32) + b1_ref[...]
    h1 = jnp.maximum(h1, 0.0)  # bias + ReLU kept in f32 (fast VPU path on v5e too)
    h2 = jnp.dot(w2_ref[...], h1.astype(cdt),
                 preferred_element_type=jnp.float32) + b2_ref[...]
    h2 = jnp.maximum(h2, 0.0)
    y = jnp.dot(w3_ref[...], h2.astype(cdt),
                preferred_element_type=jnp.float32) + b3_ref[...]
    o_ref[...] = y.astype(o_ref.dtype)


def threeout_forward(x, params, *, tb=None, storage_dtype=jnp.float32):
    """Forward pass of `threeout`.  x: [B, 3] float32 -> returns [B, 3] float32.

    params are in PyTorch layout: w [out, in], b [out].
    """
    w1, b1, w2, b2, w3, b3 = params
    B = x.shape[0]

    # Batch tile: lane-aligned, as large as useful; tiny batches -> single tile.
    if tb is None:
        tb = max(128, min(2048, _round_up(B, 128)))
    b_pad = _round_up(max(B, 1), tb)

    # Lane-dense layout: batch -> lanes.  Pad features 3 -> K_PAD, batch -> b_pad.
    x_t = jnp.pad(x, ((0, b_pad - B), (0, K_PAD - D_IN))).T.astype(storage_dtype)

    # One-time weight prep: pad fc1's K, biases as [out, 1] f32 columns.
    w1p = jnp.pad(w1, ((0, 0), (0, K_PAD - D_IN))).astype(storage_dtype)
    w2p = w2.astype(storage_dtype)
    w3p = w3.astype(storage_dtype)
    b1c = b1.reshape(D_H1, 1).astype(jnp.float32)
    b2c = b2.reshape(D_H2, 1).astype(jnp.float32)
    b3c = b3.reshape(D_OUT, 1).astype(jnp.float32)

    def resident(shape):  # weights/biases: same block for every grid step
        return pl.BlockSpec(shape, lambda i: (0, 0))

    out_t = pl.pallas_call(
        mlp_kernel,
        out_shape=jax.ShapeDtypeStruct((D_OUT, b_pad), jnp.float32),
        grid=(b_pad // tb,),
        in_specs=[
            pl.BlockSpec((K_PAD, tb), lambda i: (0, i)),    # x tile (pipelined)
            resident((D_H1, K_PAD)), resident((D_H1, 1)),   # fc1
            resident((D_H2, D_H1)),  resident((D_H2, 1)),   # fc2
            resident((D_OUT, D_H2)), resident((D_OUT, 1)),  # fc3
        ],
        out_specs=pl.BlockSpec((D_OUT, tb), lambda i: (0, i)),
        compiler_params=pltpu.CompilerParams(
            dimension_semantics=("parallel",),
            vmem_limit_bytes=32 * 1024 * 1024,
        ),
    )(x_t, w1p, b1c, w2p, b2c, w3p, b3c)

    return out_t[:, :B].T


def init_params(key):
    # nn.Linear-style init: U(-1/sqrt(fan_in), 1/sqrt(fan_in)), PyTorch layout.
    def linear(key, fan_in, fan_out):
        kw, kb = jax.random.split(key)
        bound = 1.0 / jnp.sqrt(jnp.float32(fan_in))
        w = jax.random.uniform(kw, (fan_out, fan_in), jnp.float32, -bound, bound)
        b = jax.random.uniform(kb, (fan_out,), jnp.float32, -bound, bound)
        return w, b

    k1, k2, k3 = jax.random.split(key, 3)
    w1, b1 = linear(k1, D_IN, D_H1)
    w2, b2 = linear(k2, D_H1, D_H2)
    w3, b3 = linear(k3, D_H2, D_OUT)
    return (w1, b1, w2, b2, w3, b3)


def reference(x, params):
    w1, b1, w2, b2, w3, b3 = params
    h = jnp.maximum(x @ w1.T + b1, 0.0)
    h = jnp.maximum(h @ w2.T + b2, 0.0)
    return h @ w3.T + b3


if __name__ == "__main__":
    key = jax.random.PRNGKey(0)
    kx, kp = jax.random.split(key)
    params = init_params(kp)

    # Small shape matching the module interface.
    B = 8
    x = jax.random.normal(kx, (B, D_IN), jnp.float32)
    out = jax.block_until_ready(threeout_forward(x, params))
    ref = reference(x, params)
    assert out.shape == (B, D_OUT)
    assert jnp.allclose(out, ref, atol=1e-5, rtol=1e-5)

    # Exercise the batch grid + padding path (multi-tile, B not a lane multiple).
    B2 = 300
    x2 = jax.random.normal(jax.random.PRNGKey(1), (B2, D_IN), jnp.float32)
    out2 = jax.block_until_ready(threeout_forward(x2, params, tb=128))
    ref2 = reference(x2, params)
    assert out2.shape == (B2, D_OUT)
    assert jnp.allclose(out2, ref2, atol=1e-5, rtol=1e-5)

    # bf16 storage path (halves HBM traffic on v6e/v7x); f32 accumulation inside.
    out_bf16 = jax.block_until_ready(
        threeout_forward(x2, params, tb=128, storage_dtype=jnp.bfloat16))
    assert jnp.allclose(out_bf16, ref2, atol=5e-2, rtol=5e-2)

    print("KERNEL_OK")
</pallas_src>

<mosaic_0001>
module attributes {stable_mosaic.version = 11 : i64} {
  func.func @mlp_kernel(%arg0: i32, %arg1: memref<8x128xf32, #tpu.memory_space<vmem>>, %arg2: memref<64x8xf32, #tpu.memory_space<vmem>>, %arg3: memref<64x1xf32, #tpu.memory_space<vmem>>, %arg4: memref<32x64xf32, #tpu.memory_space<vmem>>, %arg5: memref<32x1xf32, #tpu.memory_space<vmem>>, %arg6: memref<3x32xf32, #tpu.memory_space<vmem>>, %arg7: memref<3x1xf32, #tpu.memory_space<vmem>>, %arg8: memref<3x128xf32, #tpu.memory_space<vmem>>) attributes {dimension_semantics = [#tpu.dimension_semantics<parallel>], iteration_bounds = array<i64: 1>, scalar_prefetch = 0 : i64, scratch_operands = 0 : i64, tpu.core_type = #tpu.core_type<tc>, window_params = [{transform_indices = @transform_0, window_bounds = array<i64: 8, 128>}, {pipeline_mode = #tpu.pipeline_mode<synchronous>, transform_indices = @transform_1, window_bounds = array<i64: 64, 8>}, {pipeline_mode = #tpu.pipeline_mode<synchronous>, transform_indices = @transform_2, window_bounds = array<i64: 64, 1>}, {pipeline_mode = #tpu.pipeline_mode<synchronous>, transform_indices = @transform_3, window_bounds = array<i64: 32, 64>}, {pipeline_mode = #tpu.pipeline_mode<synchronous>, transform_indices = @transform_4, window_bounds = array<i64: 32, 1>}, {pipeline_mode = #tpu.pipeline_mode<synchronous>, transform_indices = @transform_5, window_bounds = array<i64: 3, 32>}, {pipeline_mode = #tpu.pipeline_mode<synchronous>, transform_indices = @transform_6, window_bounds = array<i64: 3, 1>}, {transform_indices = @transform_7, window_bounds = array<i64: 3, 128>}]} {
    %c0 = arith.constant 0 : index
    %c0_0 = arith.constant 0 : index
    %0 = vector.load %arg1[%c0, %c0_0] : memref<8x128xf32, #tpu.memory_space<vmem>>, vector<8x128xf32>
    %c0_1 = arith.constant 0 : index
    %c0_2 = arith.constant 0 : index
    %1 = vector.load %arg2[%c0_1, %c0_2] : memref<64x8xf32, #tpu.memory_space<vmem>>, vector<64x8xf32>
    %cst = arith.constant dense<0.000000e+00> : vector<64x128xf32>
    %2 = tpu.matmul %1, %0, %cst {dimension_numbers = #tpu.dot_dimension_numbers<[1], [0], [0], [1], [0, 0, 1, 1], [], []>} : vector<64x8xf32>, vector<8x128xf32>, vector<64x128xf32> -> vector<64x128xf32>
    %c0_3 = arith.constant 0 : index
    %c0_4 = arith.constant 0 : index
    %3 = vector.load %arg3[%c0_3, %c0_4] : memref<64x1xf32, #tpu.memory_space<vmem>>, vector<64x1xf32>
    %4 = vector.broadcast %3 : vector<64x1xf32> to vector<64x128xf32>
    %5 = arith.addf %2, %4 : vector<64x128xf32>
    %cst_5 = arith.constant 0.000000e+00 : f32
    %6 = vector.broadcast %cst_5 : f32 to vector<64x128xf32>
    %7 = arith.maximumf %5, %6 : vector<64x128xf32>
    %c0_6 = arith.constant 0 : index
    %c0_7 = arith.constant 0 : index
    %8 = vector.load %arg4[%c0_6, %c0_7] : memref<32x64xf32, #tpu.memory_space<vmem>>, vector<32x64xf32>
    %cst_8 = arith.constant dense<0.000000e+00> : vector<32x128xf32>
    %9 = tpu.matmul %8, %7, %cst_8 {dimension_numbers = #tpu.dot_dimension_numbers<[1], [0], [0], [1], [0, 0, 1, 1], [], []>} : vector<32x64xf32>, vector<64x128xf32>, vector<32x128xf32> -> vector<32x128xf32>
    %c0_9 = arith.constant 0 : index
    %c0_10 = arith.constant 0 : index
    %10 = vector.load %arg5[%c0_9, %c0_10] : memref<32x1xf32, #tpu.memory_space<vmem>>, vector<32x1xf32>
    %11 = vector.broadcast %10 : vector<32x1xf32> to vector<32x128xf32>
    %12 = arith.addf %9, %11 : vector<32x128xf32>
    %cst_11 = arith.constant 0.000000e+00 : f32
    %13 = vector.broadcast %cst_11 : f32 to vector<32x128xf32>
    %14 = arith.maximumf %12, %13 : vector<32x128xf32>
    %c0_12 = arith.constant 0 : index
    %c0_13 = arith.constant 0 : index
    %15 = vector.load %arg6[%c0_12, %c0_13] : memref<3x32xf32, #tpu.memory_space<vmem>>, vector<3x32xf32>
    %cst_14 = arith.constant dense<0.000000e+00> : vector<3x128xf32>
    %16 = tpu.matmul %15, %14, %cst_14 {dimension_numbers = #tpu.dot_dimension_numbers<[1], [0], [0], [1], [0, 0, 1, 1], [], []>} : vector<3x32xf32>, vector<32x128xf32>, vector<3x128xf32> -> vector<3x128xf32>
    %c0_15 = arith.constant 0 : index
    %c0_16 = arith.constant 0 : index
    %17 = vector.load %arg7[%c0_15, %c0_16] : memref<3x1xf32, #tpu.memory_space<vmem>>, vector<3x1xf32>
    %18 = vector.broadcast %17 : vector<3x1xf32> to vector<3x128xf32>
    %19 = arith.addf %16, %18 : vector<3x128xf32>
    %c0_17 = arith.constant 0 : index
    %c0_18 = arith.constant 0 : index
    %20 = vector.load %arg8[%c0_17, %c0_18] : memref<3x128xf32, #tpu.memory_space<vmem>>, vector<3x128xf32>
    tpu.vector_store %arg8[%c0_17, %c0_18], %19 {strides = array<i32>} : memref<3x128xf32, #tpu.memory_space<vmem>>, vector<3x128xf32>,
    return
  }
  func.func @transform_0(%arg0: i32) -> (i32, i32) {
    %c0_i32 = arith.constant 0 : i32
    %c0_i32_0 = arith.constant 0 : i32
    return %c0_i32, %arg0 : i32, i32
  }
  func.func @transform_1(%arg0: i32) -> (i32, i32) {
    %c0_i32 = arith.constant 0 : i32
    %c0_i32_0 = arith.constant 0 : i32
    %c0_i32_1 = arith.constant 0 : i32
    return %c0_i32, %c0_i32_0 : i32, i32
  }
  func.func @transform_2(%arg0: i32) -> (i32, i32) {
    %c0_i32 = arith.constant 0 : i32
    %c0_i32_0 = arith.constant 0 : i32
    %c0_i32_1 = arith.constant 0 : i32
    return %c0_i32, %c0_i32_0 : i32, i32
  }
  func.func @transform_3(%arg0: i32) -> (i32, i32) {
    %c0_i32 = arith.constant 0 : i32
    %c0_i32_0 = arith.constant 0 : i32
    %c0_i32_1 = arith.constant 0 : i32
    return %c0_i32, %c0_i32_0 : i32, i32
  }
  func.func @transform_4(%arg0: i32) -> (i32, i32) {
    %c0_i32 = arith.constant 0 : i32
    %c0_i32_0 = arith.constant 0 : i32
    %c0_i32_1 = arith.constant 0 : i32
    return %c0_i32, %c0_i32_0 : i32, i32
  }
  func.func @transform_5(%arg0: i32) -> (i32, i32) {
    %c0_i32 = arith.constant 0 : i32
    %c0_i32_0 = arith.constant 0 : i32
    %c0_i32_1 = arith.constant 0 : i32
    return %c0_i32, %c0_i32_0 : i32, i32
  }
  func.func @transform_6(%arg0: i32) -> (i32, i32) {
    %c0_i32 = arith.constant 0 : i32
    %c0_i32_0 = arith.constant 0 : i32
    %c0_i32_1 = arith.constant 0 : i32
    return %c0_i32, %c0_i32_0 : i32, i32
  }
  func.func @transform_7(%arg0: i32) -> (i32, i32) {
    %c0_i32 = arith.constant 0 : i32
    %c0_i32_0 = arith.constant 0 : i32
    return %c0_i32, %arg0 : i32, i32
  }
}

</mosaic_0001>

<bundles_post_ra>
// kernel: tpu_custom_call.1
= control target key start
LH: loop header
LB: loop body
LE: loop exit
PB: predicated region body
PF: predicated region fallthrough
CT: control target
= control target key end

     0   :  { %vm84_vm0 = vcmask 64512   ;;  %v587_v4 = vmov 0   ;;  %s737_s0 = inlined_call_operand.vmem [shape: f32[8,128], index: 0, kind: input, shape index: {}]   ;;  %s738_s1 = inlined_call_operand.vmem [shape: f32[64,8], index: 1, kind: input, shape index: {}]   ;;  %s739_s2 = inlined_call_operand.vmem [shape: f32[64,1], index: 2, kind: input, shape index: {}]   ;;  %s740_s3 = inlined_call_operand.vmem [shape: f32[32,64], index: 3, kind: input, shape index: {}]   ;;  %s741_s4 = inlined_call_operand.vmem [shape: f32[32,1], index: 4, kind: input, shape index: {}]   ;;  %s742_s5 = inlined_call_operand.vmem [shape: f32[3,32], index: 5, kind: input, shape index: {}]   ;;  %s743_s6 = inlined_call_operand.vmem [shape: f32[3,1], index: 6, kind: input, shape index: {}]   ;;  %s744_s7 = inlined_call_operand.hbm [shape: f32[3,128], index: 7, kind: output, shape index: {}]  }
   0x1   :  { %v27_v0 = vld [vmem:[%s737_s0] sm:$0xff]  ;;  %v29_v2 = vld [vmem:[%s738_s1 + $0x8] sm:$0xff]  ;;  %v30_v3 = vld [vmem:[%s738_s1 + $0x10] sm:$0xff]  ;;  %561 = vset.pattern.permute.xlu0 %v587_v4  ;;  %562 = vset.pattern.permute.xlu1 %v587_v4 }
   0x2   :  { %v28_v1 = vld [vmem:[%s738_s1] sm:$0xff]  ;;  %487 = vmatprep.subr.mxu0 %v27_v0  ;;  %v38_v6 = vld [vmem:[%s739_s2 + $0x10] sm:$0xff]  ;;  %v31_v7 = vld [vmem:[%s738_s1 + $0x18] sm:$0xff] }
   0x3   :  { %489 = vmatprep.mubr.msk.f32.mxu0 %vm84_vm0, %v28_v1  ;;  %488 = vmatpush3.msra.mxu0 %v27_v0  ;;  %v36_v5 = vld [vmem:[%s739_s2] sm:$0xff]  ;;  %v37_v9 = vld [vmem:[%s739_s2 + $0x8] sm:$0xff]  ;;  %v39_v10 = vld [vmem:[%s739_s2 + $0x18] sm:$0xff] }
   0x4   :  { %490 = vmatmul.mubr.msk.f32.vlgmr.msra.gmra.mrb[0].mxu0 %vm84_vm0, %v29_v2  ;;  %46 = vperm.xlu0 %561, %v36_v5   ;;  %v32_v8 = vld [vmem:[%s738_s1 + $0x20] sm:$0xff] }
   0x5   :  { %492 = vmatprep.mubr.msk.f32.mxu0 %vm84_vm0, %v30_v3  ;;  %56 = vperm.xlu1 %562, %v38_v6  }
   0x8   :  { %493 = vmatmul.mubr.msk.f32.gmra.mrb[2].mxu0 %vm84_vm0, %v31_v7 }
   0x9   :  { %12 = vsyncpa [#allocation3], 0  ;;  %495 = vmatprep.mubr.msk.f32.mxu0 %vm84_vm0, %v32_v8  ;;  %v33_v11 = vld [vmem:[%s738_s1 + $0x28] sm:$0xff]  ;;  %51 = vperm.xlu0 %561, %v37_v9   ;;  %v34_v12 = vld [vmem:[%s738_s1 + $0x30] sm:$0xff]  ;;  %vm250_vm1 = vcmask 523264   ;;  %v588_v63 = vmov 0.0|0.0  }
   0xa   :  { %v40_v13 = vld [vmem:[%s739_s2 + $0x20] sm:$0xff]  ;;  %61 = vperm.xlu1 %562, %v39_v10   ;;  %v41_v14 = vld [vmem:[%s739_s2 + $0x28] sm:$0xff]  ;;  %v35_v15 = vld [vmem:[%s738_s1 + $0x38] sm:$0xff]  ;;  %550 = vmatprep.subr.bf16.mxu0 %v588_v63  ;;  %vm589_vm2 = vmmov 0   ;;  %v590_v0 = vmov 0.0   ;;  %vm359_vm3 = vcmask 261120  }
   0xb   :  { %v42_v16 = vld [vmem:[%s739_s2 + $0x30] sm:$0xff]  ;;  %v43_v17 = vld [vmem:[%s739_s2 + $0x38] sm:$0xff]  ;;  %v226_v18 = vld [vmem:[%s741_s4] sm:$0xff]  ;;  %s591_s25 = smov [#allocation2]  }
   0xc   :  { %496 = vmatmul.mubr.msk.f32.gmra.mrb[4].mxu0 %vm84_vm0, %v33_v11  ;;  %v227_v19 = vld [vmem:[%s741_s4 + $0x8] sm:$0xff]  ;;  %v228_v20 = vld [vmem:[%s741_s4 + $0x10] sm:$0xff]  ;;  %v229_v21 = vld [vmem:[%s741_s4 + $0x18] sm:$0xff]  ;;  %s440_s26 = sshll.u32 %s591_s25, 4  ;;  %s441_s26 = int_to_ptr.vmem [resolvable:$true] %s440_s26 }
   0xd   :  { %498 = vmatprep.mubr.msk.f32.mxu0 %vm84_vm0, %v34_v12  ;;  %66 = vperm.xlu0 %561, %v40_v13   ;;  %v353_v22 = vld [vmem:[%s743_s6] sm:$0x7]  ;;  %v223_v60 = vld [vmem:[%s740_s3 + $0x8] sm:$0xff]  ;;  %v224_v61 = vld [vmem:[%s740_s3 + $0x10] sm:$0xff]  ;;  %s563_s27 = scalar_lea.vmem %s441_s26, 64  ;;  %p568_p1 = scmp.lt.s32.totalorder %s441_s26, %s441_s26 }
   0xe   :  { %71 = vperm.xlu1 %562, %v41_v14   ;;  %v222_v23 = vld [vmem:[%s740_s3] sm:$0xff]  ;;  %v225_v62 = vld [vmem:[%s740_s3 + $0x18] sm:$0xff]  ;;  %p564_p0 = scmp.ne.s32.totalorder %s441_s26, %s563_s27  ;;  %p569_p2 = scmp.lt.s32.totalorder %s563_s27, %s563_s27 }
   0xf   :  { %517 = vmatprep.mubr.msk.f32.mxu1 %vm250_vm1, %v222_v23 }
  0x10   :  { %499 = vmatmul.mubr.msk.f32.gmra.mrb[6].mxu0 %vm84_vm0, %v35_v15  ;;  %p570_p3 = por %p569_p2, %p568_p1 }
  0x11   :  { %76 = vperm.xlu0 %561, %v42_v16   ;;  %531 = vmatprep.mubr.msk.f32.mxu0 %vm589_vm2, %v590_v0 }
  0x12   :  { %81 = vperm.xlu1 %562, %v43_v17   ;;  %p571_p4 = pnand %p570_p3, %p564_p0 }
  0x15   :  { %232 = vperm.xlu0 %561, %v226_v18  }
  0x16   :  { %237 = vperm.xlu1 %562, %v227_v19   ;;  %v352_v19 = vld [vmem:[%s742_s5] sm:$0x7] }
  0x19   :  { %242 = vperm.xlu0 %561, %v228_v20  }
  0x1a   :  { %247 = vperm.xlu1 %562, %v229_v21  }
  0x1d   :  { %356 = vperm.xlu0 %561, %v353_v22  }
  0x83   :  { %v47_v24 = vpop.permute.xlu0 %46 }
  0x84   :  { %v57_v25 = vpop.permute.xlu1 %56 }
  0x88   :  { %v52_v26 = vpop.permute.xlu0 %51 }
  0x89   :  { %v62_v27 = vpop.permute.xlu1 %61 }
  0x8c   :  { %v67_v40 = vpop.permute.xlu0 %66 }
  0x8d   :  { %v72_v37 = vpop.permute.xlu1 %71 }
  0x90   :  { %v77_v52 = vpop.permute.xlu0 %76 }
  0x91   :  { %v82_v49 = vpop.permute.xlu1 %81 }
  0x94   :  { %v233_v2 = vpop.permute.xlu0 %232 }
  0x95   :  { %v238_v1 = vpop.permute.xlu1 %237 }
  0x98   :  { %v243_v11 = vpop.permute.xlu0 %242 }
  0x99   :  { %v248_v8 = vpop.permute.xlu1 %247 }
  0x9c   :  { %v357_v20 = vpop.permute.xlu0 %356 }
  0xd7   :  { %v491_v28 = vpop.f32.mrb[0].mxu0 }
  0xd8   :  { %v181_v29 = vadd.f32 %v491_v28, %v52_v26  ;;  %v175_v30 = vpop.f32.mrb[1].mxu0 }
  0xd9   :  { %v176_v31 = vadd.f32 %v175_v30, %v47_v24 }
  0xda   :  { %v215_v32 = vmax.f32 %v181_v29, 0.0 }
  0xdb   :  { %v214_v33 = vmax.f32 %v176_v31, 0.0  ;;  %v494_v34 = vpop.f32.mrb[2].mxu0 }
  0xdc   :  { %v191_v35 = vadd.f32 %v494_v34, %v62_v27  ;;  %v185_v36 = vpop.f32.mrb[3].mxu0 }
  0xdd   :  { %v186_v38 = vadd.f32 %v185_v36, %v57_v25  ;;  %v534_v39 = vpack.c.bf16 %v215_v32, %v214_v33 }
  0xde   :  { %v217_v41 = vmax.f32 %v191_v35, 0.0 }
  0xdf   :  { %v216_v42 = vmax.f32 %v186_v38, 0.0  ;;  %v497_v43 = vpop.f32.mrb[4].mxu0  ;;  %535 = vmatprep.subr.bf16.mxu1 %v534_v39 }
  0xe0   :  { %v201_v44 = vadd.f32 %v497_v43, %v72_v37  ;;  %v195_v45 = vpop.f32.mrb[5].mxu0  ;;  %537 = vmatpush3.bf16.msra.mxu1 %v534_v39 }
  0xe1   :  { %v538_v46 = vpack.c.bf16 %v217_v41, %v216_v42  ;;  %v196_v47 = vadd.f32 %v195_v45, %v67_v40 }
  0xe2   :  { %v219_v48 = vmax.f32 %v201_v44, 0.0 }
  0xe3   :  { %v218_v50 = vmax.f32 %v196_v47, 0.0  ;;  %v500_v51 = vpop.f32.mrb[6].mxu0  ;;  %539 = vmatprep.subr.bf16.mxu1 %v538_v46 }
  0xe4   :  { %v211_v53 = vadd.f32 %v500_v51, %v82_v49  ;;  %v205_v54 = vpop.f32.mrb[7].mxu0  ;;  %541 = vmatpush3.bf16.msra.mxu1 %v538_v46 }
  0xe5   :  { %v542_v55 = vpack.c.bf16 %v219_v48, %v218_v50  ;;  %v206_v56 = vadd.f32 %v205_v54, %v77_v52 }
  0xe6   :  { %v221_v57 = vmax.f32 %v211_v53, 0.0 }
  0xe7   :  { %v220_v58 = vmax.f32 %v206_v56, 0.0  ;;  %543 = vmatprep.subr.bf16.mxu1 %v542_v55 }
  0xe8   :  { %545 = vmatpush3.bf16.msra.mxu1 %v542_v55 }
  0xe9   :  { %v546_v59 = vpack.c.bf16 %v221_v57, %v220_v58 }
  0xeb   :  { %547 = vmatprep.subr.bf16.mxu1 %v546_v59 }
  0xec   :  { %549 = vmatpush3.bf16.msra.mxu1 %v546_v59 }
  0xef   :  { %518 = vmatmul.mubr.msk.f32.vlgmr.msra.gmra.mrb[0].mxu1 %vm250_vm1, %v223_v60 }
  0xf0   :  { %520 = vmatprep.mubr.msk.f32.mxu1 %vm250_vm1, %v224_v61 }
  0xf3   :  { %521 = vmatmul.mubr.msk.f32.gmra.mrb[2].mxu1 %vm250_vm1, %v225_v62 }
 0x1c2   :  { %v519_v3 = vpop.f32.mrb[0].mxu1 }
 0x1c3   :  { %v335_v4 = vadd.f32 %v519_v3, %v238_v1  ;;  %v329_v5 = vpop.f32.mrb[1].mxu1 }
 0x1c4   :  { %v330_v6 = vadd.f32 %v329_v5, %v233_v2 }
 0x1c5   :  { %v349_v7 = vmax.f32 %v335_v4, 0.0 }
 0x1c6   :  { %v348_v9 = vmax.f32 %v330_v6, 0.0  ;;  %v522_v10 = vpop.f32.mrb[2].mxu1 }
 0x1c7   :  { %v345_v12 = vadd.f32 %v522_v10, %v248_v8  ;;  %v339_v13 = vpop.f32.mrb[3].mxu1 }
 0x1c8   :  { %v551_v14 = vpack.c.bf16 %v349_v7, %v348_v9  ;;  %v340_v15 = vadd.f32 %v339_v13, %v243_v11 }
 0x1c9   :  { %v351_v16 = vmax.f32 %v345_v12, 0.0 }
 0x1ca   :  { %v350_v17 = vmax.f32 %v340_v15, 0.0  ;;  %552 = vmatpush3.bf16.msra.mxu0 %v551_v14 }
 0x1cb   :  { %553 = vmatprep.subr.bf16.mxu0 %v588_v63 }
 0x1cc   :  { %v554_v18 = vpack.c.bf16 %v351_v16, %v350_v17 }
 0x1ce   :  { %555 = vmatpush3.bf16.msra.mxu0 %v554_v18 }
 0x1d1   :  { %532 = vmatmul.mubr.msk.f32.vlgmr.msra.gmra.mrb[8].mxu0 %vm359_vm3, %v352_v19 }
 0x2a4   :  { %v429_v21 = vpop.f32.mrb[8].mxu0 }
 0x2a5   :  { %v430_v22 = vadd.f32 %v429_v21, %v357_v20  ;;  %v533_v23 = vpop.f32.mrb[9].mxu0 }
 0x2a7   :  { %433 = vst [vmem:[#allocation2] sm:$0x7] %v430_v22 }
 0x2a8   :  { %574 = shalt.err (!%p571_p4)
}
 0x2a9   :  { %s575_s5 = scalar_lea.hbm %s744_s7, 64 }
 0x2aa   :  { %p576_p5 = scmp.ne.s32.totalorder %s744_s7, %s575_s5  ;;  %p579_p6 = scmp.lt.u32.totalorder %s575_s5, %s744_s7 }
 0x2ac   :  { %p581_p7 = pnand %p579_p6, %p576_p5 }
 0x2ae   :  { %584 = shalt.err (!%p581_p7)
}
 0x2af   :  { %443 = dma.vmem_to_hbm [thread:$0]  %s441_s26, 64, %s744_s7, [#allocation3]  }
 0x2b0   :  { %585 = dma.done.wait [#allocation3], 64  }
 0x2b1   :  { %586 = vsyncadd [#allocation3], 4294967232 }
 0x2b2   :  { %447 = vsyncpa [#allocation3], 1 }

</bundles_post_ra>
